<compile_context>
chip_gen: v7x
topology: tpu7x:2x2x1
jax: 0.10.0
libtpu: 0.0.40
codegen_flags: <defaults>
</compile_context>

<pallas_src>
import functools

import jax
import jax.numpy as jnp
from jax.experimental import pallas as pl
from jax.experimental.pallas import tpu as pltpu


def _cdiv(a, b):
    return -(-a // b)


def _round_up(a, b):
    return _cdiv(a, b) * b


def _chip_traits():
    """Returns (tensorcores_per_chip, per_input_tile_bytes, vmem_limit_bytes).

    Generation-gated VMEM budget:
      * v7x     : 2 TCs, only 64 MiB physical VMEM -> 4 MiB per input tile,
                  stay inside the 32 MiB scoped default.
      * v5/v6   : 1 TC (for our purposes), 128 MiB VMEM -> 8 MiB per input
                  tile, 64 MiB scoped limit (fewer grid steps, longer DMAs).
      * unknown : conservative, v7x-safe settings.
    """
    kind = ""
    try:
        kind = jax.devices()[0].device_kind.lower()
    except Exception:
        pass
    if "7" in kind:  # "TPU7x" / "TPU v7..."
        return 2, 4 * 1024 * 1024, 32 * 1024 * 1024
    if ("v5" in kind) or ("v6" in kind):
        return 1, 8 * 1024 * 1024, 64 * 1024 * 1024
    return 1, 4 * 1024 * 1024, 32 * 1024 * 1024


# --------------------------------------------------------------------------
# Pallas kernel: one (chunk, tile) grid step.
#   tgt_ref / pred_ref : (P, TILE_NL)  transposed patch tiles (native dtype)
#   mask_ref           : (1, TILE_NL)  per-patch mask (caller dtype)
#   out_ref            : (1, 1, 1)     per-chunk accumulator: sum(mask * mse)
# --------------------------------------------------------------------------
def _mae_loss_kernel(tgt_ref, pred_ref, mask_ref, out_ref, *, patch_pixels,
                     norm_pix_loss, nl, tile_nl, tiles_per_chunk):
    c = pl.program_id(0)
    t = pl.program_id(1)

    @pl.when(t == 0)
    def _():
        out_ref[...] = jnp.zeros_like(out_ref)

    tgt = tgt_ref[...].astype(jnp.float32)     # (P, TILE_NL)
    pred = pred_ref[...].astype(jnp.float32)   # (P, TILE_NL)
    mask = mask_ref[...].astype(jnp.float32)   # (1, TILE_NL)

    # Lane-validity for the ragged last tile: columns beyond the true N*L read
    # out-of-bounds garbage (possibly Inf/NaN) and must be select-ed away
    # (multiplying by mask==0 would not kill a NaN).
    col0 = (c * tiles_per_chunk + t) * tile_nl
    lane = jax.lax.broadcasted_iota(jnp.int32, (1, tile_nl), 1)
    valid = (lane + col0) < nl                 # (1, TILE_NL) bool

    p = patch_pixels
    if norm_pix_loss:
        mean = jnp.mean(tgt, axis=0, keepdims=True)            # (1, TILE_NL)
        centered = tgt - mean
        # torch.var default is unbiased (divide by P - 1); max() only guards a
        # degenerate P == 1 config against a Python ZeroDivisionError.
        var = jnp.sum(centered * centered, axis=0, keepdims=True) * (
            1.0 / max(p - 1, 1))
        tgt = centered * jax.lax.rsqrt(var + 1e-6)

    diff = pred - tgt
    per_patch = jnp.sum(diff * diff, axis=0, keepdims=True) * (1.0 / p)
    contrib = jnp.where(valid, per_patch * mask, 0.0)
    out_ref[...] = out_ref[...] + jnp.sum(contrib)


# --------------------------------------------------------------------------
# Wrapper: tiling / pallas_call (no padding copies)
# --------------------------------------------------------------------------
def masked_patch_loss(target_t, pred_t, mask, *, norm_pix_loss=True):
    """target_t / pred_t: (P, N*L) transposed patch matrices (native dtype).
    mask: (N, L), any numeric dtype. Returns the scalar masked-patch MSE loss."""
    p, nl = target_t.shape
    assert pred_t.shape == (p, nl)

    tensorcores, tile_budget_bytes, vmem_limit = _chip_traits()
    itemsize = target_t.dtype.itemsize

    # Lane tile over N*L: multiple of 128, sized so ONE input tile is roughly
    # tile_budget_bytes (2 inputs x 2 pipeline buffers stays well inside the
    # scoped VMEM limit).  Never bigger than the lane-rounded data.
    tile_nl = max(128, (tile_budget_bytes // (p * itemsize)) // 128 * 128)
    tile_nl = min(tile_nl, _round_up(nl, 128))

    total_tiles = _cdiv(nl, tile_nl)
    # Leading "parallel" chunk axis only pays off with >1 TensorCore (v7x) and
    # only when the tiles split evenly (an uneven split would create a fully
    # out-of-bounds trailing block for the second chunk).
    if tensorcores >= 2 and total_tiles >= 4 and total_tiles % 2 == 0:
        num_chunks = 2
        tiles_per_chunk = total_tiles // 2
    else:
        num_chunks = 1
        tiles_per_chunk = total_tiles

    # No jnp.pad: the kernel masks the ragged tail, so the two big inputs are
    # read from HBM exactly once by the kernel's pipelined DMAs.
    mask_flat = mask.reshape(1, nl)            # keep caller dtype; cast in-kernel
    mask_itemsize = jnp.dtype(mask_flat.dtype).itemsize

    kernel = functools.partial(
        _mae_loss_kernel, patch_pixels=p, norm_pix_loss=norm_pix_loss, nl=nl,
        tile_nl=tile_nl, tiles_per_chunk=tiles_per_chunk)

    col_map = lambda c, t: (0, c * tiles_per_chunk + t)

    cost = pl.CostEstimate(
        flops=(8 if norm_pix_loss else 3) * p * nl,
        transcendentals=(nl if norm_pix_loss else 0),
        bytes_accessed=2 * p * nl * itemsize + nl * mask_itemsize + 4 * num_chunks,
    )

    partial_sums = pl.pallas_call(
        kernel,
        out_shape=jax.ShapeDtypeStruct((num_chunks, 1, 1), jnp.float32),
        grid=(num_chunks, tiles_per_chunk),
        in_specs=[
            pl.BlockSpec((p, tile_nl), col_map),
            pl.BlockSpec((p, tile_nl), col_map),
            pl.BlockSpec((1, tile_nl), col_map),
        ],
        out_specs=pl.BlockSpec((1, 1, 1), lambda c, t: (c, 0, 0)),
        compiler_params=pltpu.CompilerParams(
            dimension_semantics=("parallel", "arbitrary"),
            vmem_limit_bytes=vmem_limit,
        ),
        cost_estimate=cost,
    )(target_t, pred_t, mask_flat)

    num = jnp.sum(partial_sums)
    den = jnp.sum(mask.astype(jnp.float32))   # mask.sum(): tiny reduction, plain JAX.
    # NOTE: matches the torch module exactly (NaN if mask.sum() == 0).
    return num / den


# --------------------------------------------------------------------------
# Glue: patchify (pure reshape/transpose, identical to the torch einsum)
# --------------------------------------------------------------------------
def patchify(imgs, patch_size, in_channel):
    """imgs: (N, C, H, W) -> (N, h*w, ph*pw*C). Same as the torch path."""
    ph, pw = patch_size
    n, c, hh, ww = imgs.shape
    assert c == in_channel
    h, w = hh // ph, ww // pw
    x = imgs.reshape(n, c, h, ph, w, pw)
    x = jnp.transpose(x, (0, 2, 4, 3, 5, 1))   # nchpwq -> nhwpqc
    return x.reshape(n, h * w, ph * pw * c)


def patchify_to_lanes(imgs, patch_size, in_channel):
    """imgs: (N, C, H, W) -> (ph*pw*C, N*h*w): transposed patch matrix with the
    large patch-count axis on the lane dimension.  Column order matches
    patchify(imgs).reshape(N*L, P) row order; row order matches its P order."""
    ph, pw = patch_size
    n, c, hh, ww = imgs.shape
    assert c == in_channel
    h, w = hh // ph, ww // pw
    x = imgs.reshape(n, c, h, ph, w, pw)
    x = jnp.transpose(x, (3, 5, 1, 0, 2, 4))   # (ph, pw, c, n, h, w)
    return x.reshape(ph * pw * c, n * h * w)


def mae_loss_forward(padded_x, decoded_x, masks, config):
    """Replicates MAELoss.forward for the generative (non-TransformerV4) branch."""
    # TODO(synk): TransformerV4 branch (freq patch_size lookup, no pred patchify)
    # is not exercised here; only the MAE/generative branch is implemented.
    total_loss = jnp.float32(0.0)
    for loc in config["location_names"]:
        for mod in config["modality_names"]:
            patch_size = config["MAE"]["patch_size"][mod]
            in_channel = config["loc_mod_in_freq_channels"]["shake"][mod]
            target_t = patchify_to_lanes(padded_x[loc][mod], patch_size, in_channel)
            pred_t = patchify_to_lanes(decoded_x[loc][mod], patch_size, in_channel)
            n = decoded_x[loc][mod].shape[0]
            mask = masks[loc][mod].reshape(n, -1)
            total_loss = total_loss + masked_patch_loss(
                target_t, pred_t, mask, norm_pix_loss=True)
    return total_loss


# --------------------------------------------------------------------------
# Pure-JAX reference (for sanity check)
# --------------------------------------------------------------------------
def _reference_forward(padded_x, decoded_x, masks, config):
    total = jnp.float32(0.0)
    for loc in config["location_names"]:
        for mod in config["modality_names"]:
            patch_size = config["MAE"]["patch_size"][mod]
            in_channel = config["loc_mod_in_freq_channels"]["shake"][mod]
            target = patchify(padded_x[loc][mod], patch_size, in_channel)
            pred = patchify(decoded_x[loc][mod], patch_size, in_channel)
            mask = masks[loc][mod].reshape(pred.shape[0], -1).astype(jnp.float32)
            mean = target.mean(axis=-1, keepdims=True)
            var = target.var(axis=-1, keepdims=True, ddof=1)   # torch unbiased var
            target = (target - mean) / (var + 1e-6) ** 0.5
            loss = ((pred - target) ** 2).mean(axis=-1)
            total = total + (loss * mask).sum() / mask.sum()
    return total


if __name__ == "__main__":
    key = jax.random.PRNGKey(0)

    # Synthetic dataset config (shapes consistent with the module's forward).
    config = {
        "location_names": ["shake"],
        "modality_names": ["audio", "seismic"],
        "loc_mod_in_freq_channels": {"shake": {"audio": 2, "seismic": 4}},
        "MAE": {"patch_size": {"audio": (4, 4), "seismic": (2, 2)}},
    }
    # Per-modality NCHW input shapes.
    img_shapes = {"audio": (2, 2, 16, 16), "seismic": (2, 4, 8, 8)}

    padded_x = {"shake": {}}
    decoded_x = {"shake": {}}
    masks = {"shake": {}}

    for mod in config["modality_names"]:
        key, k1, k2, k3 = jax.random.split(key, 4)
        n, c, hh, ww = img_shapes[mod]
        ph, pw = config["MAE"]["patch_size"][mod]
        num_patches = (hh // ph) * (ww // pw)

        padded_x["shake"][mod] = jax.random.normal(k1, (n, c, hh, ww), jnp.float32)
        decoded_x["shake"][mod] = jax.random.normal(k2, (n, c, hh, ww), jnp.float32)

        m = (jax.random.uniform(k3, (n, num_patches)) > 0.25).astype(jnp.float32)
        m = m.at[0, 0].set(1.0)   # guarantee mask.sum() > 0
        masks["shake"][mod] = m

    loss = mae_loss_forward(padded_x, decoded_x, masks, config)
    loss = jax.block_until_ready(loss)

    ref = _reference_forward(padded_x, decoded_x, masks, config)
    assert jnp.allclose(loss, ref, rtol=1e-4, atol=1e-5), (loss, ref)

    print("KERNEL_OK")
</pallas_src>

<mosaic_0001>
module attributes {stable_mosaic.version = 11 : i64} {
  func.func @_mae_loss_kernel(%arg0: i32, %arg1: i32, %arg2: memref<32x128xf32, #tpu.memory_space<vmem>>, %arg3: memref<32x128xf32, #tpu.memory_space<vmem>>, %arg4: memref<1x128xf32, #tpu.memory_space<vmem>>, %arg5: memref<1x1x1xf32, #tpu.memory_space<vmem>>) attributes {dimension_semantics = [#tpu.dimension_semantics<parallel>, #tpu.dimension_semantics<arbitrary>], iteration_bounds = array<i64: 1, 1>, scalar_prefetch = 0 : i64, scratch_operands = 0 : i64, tpu.core_type = #tpu.core_type<tc>, window_params = [{transform_indices = @transform_0, window_bounds = array<i64: 32, 128>}, {transform_indices = @transform_1, window_bounds = array<i64: 32, 128>}, {transform_indices = @transform_2, window_bounds = array<i64: 1, 128>}, {transform_indices = @transform_3, window_bounds = array<i64: 1, 1, 1>}]} {
    %c0_i32 = arith.constant 0 : i32
    %0 = arith.cmpi eq, %arg1, %c0_i32 : i32
    %1 = arith.extui %0 : i1 to i32
    %c0_i32_0 = arith.constant 0 : i32
    %2 = arith.cmpi ne, %1, %c0_i32_0 : i32
    scf.if %2 {
      %cst_20 = arith.constant 0.000000e+00 : f32
      %47 = vector.broadcast %cst_20 : f32 to vector<1x1x1xf32>
      %c0_21 = arith.constant 0 : index
      %c0_22 = arith.constant 0 : index
      %c0_23 = arith.constant 0 : index
      %48 = vector.load %arg5[%c0_21, %c0_22, %c0_23] : memref<1x1x1xf32, #tpu.memory_space<vmem>>, vector<1x1x1xf32>
      tpu.vector_store %arg5[%c0_21, %c0_22, %c0_23], %47 {strides = array<i32>} : memref<1x1x1xf32, #tpu.memory_space<vmem>>, vector<1x1x1xf32>,
    } else {
    }
    %c0 = arith.constant 0 : index
    %c0_1 = arith.constant 0 : index
    %3 = vector.load %arg2[%c0, %c0_1] : memref<32x128xf32, #tpu.memory_space<vmem>>, vector<32x128xf32>
    %c0_2 = arith.constant 0 : index
    %c0_3 = arith.constant 0 : index
    %4 = vector.load %arg3[%c0_2, %c0_3] : memref<32x128xf32, #tpu.memory_space<vmem>>, vector<32x128xf32>
    %c0_4 = arith.constant 0 : index
    %c0_5 = arith.constant 0 : index
    %5 = vector.load %arg4[%c0_4, %c0_5] : memref<1x128xf32, #tpu.memory_space<vmem>>, vector<1x128xf32>
    %c1_i32 = arith.constant 1 : i32
    %6 = arith.muli %arg0, %c1_i32 : i32
    %7 = arith.addi %6, %arg1 : i32
    %c128_i32 = arith.constant 128 : i32
    %8 = arith.muli %7, %c128_i32 : i32
    %9 = tpu.iota {dimensions = array<i32: 1>} : vector<1x128xi32>
    %10 = vector.broadcast %8 : i32 to vector<1x128xi32>
    %11 = arith.addi %9, %10 : vector<1x128xi32>
    %c32_i32 = arith.constant 32 : i32
    %12 = vector.broadcast %c32_i32 : i32 to vector<1x128xi32>
    %13 = arith.cmpi slt, %11, %12 : vector<1x128xi32>
    %cst = arith.constant dense<0.000000e+00> : vector<128xf32>
    %14 = vector.multi_reduction <add>, %3, %cst [0] : vector<32x128xf32> to vector<128xf32>
    %15 = vector.shape_cast %14 : vector<128xf32> to vector<1x128xf32>
    %cst_6 = arith.constant 3.200000e+01 : f32
    %16 = vector.broadcast %cst_6 : f32 to vector<1x128xf32>
    %17 = arith.divf %15, %16 : vector<1x128xf32>
    %18 = vector.broadcast %17 : vector<1x128xf32> to vector<32x128xf32>
    %19 = arith.subf %3, %18 : vector<32x128xf32>
    %20 = arith.mulf %19, %19 : vector<32x128xf32>
    %cst_7 = arith.constant dense<0.000000e+00> : vector<128xf32>
    %21 = vector.multi_reduction <add>, %20, %cst_7 [0] : vector<32x128xf32> to vector<128xf32>
    %22 = vector.shape_cast %21 : vector<128xf32> to vector<1x128xf32>
    %cst_8 = arith.constant 0.0322580636 : f32
    %23 = vector.broadcast %cst_8 : f32 to vector<1x128xf32>
    %24 = arith.mulf %22, %23 : vector<1x128xf32>
    %cst_9 = arith.constant 9.99999997E-7 : f32
    %25 = vector.broadcast %cst_9 : f32 to vector<1x128xf32>
    %26 = arith.addf %24, %25 : vector<1x128xf32>
    %27 = math.rsqrt %26 : vector<1x128xf32>
    %28 = vector.broadcast %27 : vector<1x128xf32> to vector<32x128xf32>
    %29 = arith.mulf %19, %28 : vector<32x128xf32>
    %30 = arith.subf %4, %29 : vector<32x128xf32>
    %31 = arith.mulf %30, %30 : vector<32x128xf32>
    %cst_10 = arith.constant dense<0.000000e+00> : vector<128xf32>
    %32 = vector.multi_reduction <add>, %31, %cst_10 [0] : vector<32x128xf32> to vector<128xf32>
    %33 = vector.shape_cast %32 : vector<128xf32> to vector<1x128xf32>
    %cst_11 = arith.constant 3.125000e-02 : f32
    %34 = vector.broadcast %cst_11 : f32 to vector<1x128xf32>
    %35 = arith.mulf %33, %34 : vector<1x128xf32>
    %36 = arith.mulf %35, %5 : vector<1x128xf32>
    %cst_12 = arith.constant 0.000000e+00 : f32
    %37 = vector.broadcast %cst_12 : f32 to vector<1x128xf32>
    %38 = arith.select %13, %36, %37 : vector<1x128xi1>, vector<1x128xf32>
    %c0_13 = arith.constant 0 : index
    %c0_14 = arith.constant 0 : index
    %c0_15 = arith.constant 0 : index
    %39 = vector.load %arg5[%c0_13, %c0_14, %c0_15] : memref<1x1x1xf32, #tpu.memory_space<vmem>>, vector<1x1x1xf32>
    %40 = vector.shape_cast %38 : vector<1x128xf32> to vector<1x1x128xf32>
    %cst_16 = arith.constant dense<0.000000e+00> : vector<1xf32>
    %41 = vector.multi_reduction <add>, %40, %cst_16 [1, 2] : vector<1x1x128xf32> to vector<1xf32>
    %42 = vector.shape_cast %41 : vector<1xf32> to vector<1x1x1xf32>
    %43 = vector.extract %42[0, 0, 0] : f32 from vector<1x1x1xf32>
    %44 = vector.broadcast %43 : f32 to vector<1x1x1xf32>
    %45 = arith.addf %39, %44 : vector<1x1x1xf32>
    %c0_17 = arith.constant 0 : index
    %c0_18 = arith.constant 0 : index
    %c0_19 = arith.constant 0 : index
    %46 = vector.load %arg5[%c0_17, %c0_18, %c0_19] : memref<1x1x1xf32, #tpu.memory_space<vmem>>, vector<1x1x1xf32>
    tpu.vector_store %arg5[%c0_17, %c0_18, %c0_19], %45 {strides = array<i32>} : memref<1x1x1xf32, #tpu.memory_space<vmem>>, vector<1x1x1xf32>,
    return
  }
  func.func @transform_0(%arg0: i32, %arg1: i32) -> (i32, i32) {
    %c1_i32 = arith.constant 1 : i32
    %0 = arith.muli %arg0, %c1_i32 : i32
    %1 = arith.addi %0, %arg1 : i32
    %c0_i32 = arith.constant 0 : i32
    %c0_i32_0 = arith.constant 0 : i32
    return %c0_i32, %1 : i32, i32
  }
  func.func @transform_1(%arg0: i32, %arg1: i32) -> (i32, i32) {
    %c1_i32 = arith.constant 1 : i32
    %0 = arith.muli %arg0, %c1_i32 : i32
    %1 = arith.addi %0, %arg1 : i32
    %c0_i32 = arith.constant 0 : i32
    %c0_i32_0 = arith.constant 0 : i32
    return %c0_i32, %1 : i32, i32
  }
  func.func @transform_2(%arg0: i32, %arg1: i32) -> (i32, i32) {
    %c1_i32 = arith.constant 1 : i32
    %0 = arith.muli %arg0, %c1_i32 : i32
    %1 = arith.addi %0, %arg1 : i32
    %c0_i32 = arith.constant 0 : i32
    %c0_i32_0 = arith.constant 0 : i32
    return %c0_i32, %1 : i32, i32
  }
  func.func @transform_3(%arg0: i32, %arg1: i32) -> (i32, i32, i32) {
    %c0_i32 = arith.constant 0 : i32
    %c0_i32_0 = arith.constant 0 : i32
    %c0_i32_1 = arith.constant 0 : i32
    return %arg0, %c0_i32, %c0_i32_0 : i32, i32, i32
  }
}

</mosaic_0001>

<bundles_post_ra>
// kernel: tpu_custom_call.1
= control target key start
LH: loop header
LB: loop body
LE: loop exit
PB: predicated region body
PF: predicated region fallthrough
CT: control target
= control target key end

     0   :  { %8 = vsyncpa [#allocation3], 0  ;;  %s326_s0 = inlined_call_operand.hbm [shape: f32[32,32], index: 0, kind: input, shape index: {}]   ;;  %s327_s1 = inlined_call_operand.hbm [shape: f32[32,32], index: 1, kind: input, shape index: {}]   ;;  %s328_s2 = inlined_call_operand.vmem [shape: f32[1,32], index: 2, kind: input, shape index: {}]   ;;  %s329_s3 = inlined_call_operand.hbm [shape: f32[1,1,1], index: 3, kind: output, shape index: {}]  }
   0x1   :  { %9 = vsyncpa [#allocation6], 0 }
   0x2   :  { %10 = vsyncpa [#allocation4], 0  ;;  %s259_s12 = smov [#allocation2]   ;;  %s187_s16 = scalar_lea.hbm %s326_s0, 512 }
   0x3   :  { %s19_s13 = sshll.u32 %s259_s12, 4  ;;  %p188_p0 = scmp.ne.s32.totalorder %s326_s0, %s187_s16  ;;  %s20_s13 = int_to_ptr.vmem [resolvable:$true] %s19_s13 }
   0x4   :  { %p191_p1 = scmp.lt.u32.totalorder %s187_s16, %s326_s0 }
   0x6   :  { %p193_p2 = pnand %p191_p1, %p188_p0 }
   0x8   :  { %196 = shalt.err (!%p193_p2)
}
   0x9   :  { %s197_s21 = scalar_lea.vmem %s20_s13, 512  ;;  %p202_p4 = scmp.lt.s32.totalorder %s20_s13, %s20_s13 }
   0xa   :  { %p198_p3 = scmp.ne.s32.totalorder %s20_s13, %s197_s21  ;;  %p203_p5 = scmp.lt.s32.totalorder %s197_s21, %s197_s21 }
   0xc   :  { %p204_p6 = por %p203_p5, %p202_p4 }
   0xe   :  { %p205_p7 = pnand %p204_p6, %p198_p3 }
  0x10   :  { %208 = shalt.err (!%p205_p7)
}
  0x11   :  { %s260_s22 = smov 128   ;;  %s261_s23 = smov 8  }
  0x12   :  { %25 = dma.hbm_to_vmem [thread:$0]  %s326_s0, 512, %s20_s13, [#allocation3], %s260_s22, %s260_s22, %s261_s23  }
  0x13   :  { %s262_s26 = smov [#allocation5]   ;;  %s209_s30 = scalar_lea.hbm %s327_s1, 512 }
  0x14   :  { %s34_s27 = sshll.u32 %s262_s26, 4  ;;  %p210_p8 = scmp.ne.s32.totalorder %s327_s1, %s209_s30  ;;  %s35_s27 = int_to_ptr.vmem [resolvable:$true] %s34_s27 }
  0x15   :  { %p213_p9 = scmp.lt.u32.totalorder %s209_s30, %s327_s1 }
  0x17   :  { %p215_p10 = pnand %p213_p9, %p210_p8 }
  0x19   :  { %218 = shalt.err (!%p215_p10)
}
  0x1a   :  { %s219_s8 = scalar_lea.vmem %s35_s27, 512  ;;  %p224_p12 = scmp.lt.s32.totalorder %s35_s27, %s35_s27 }
  0x1b   :  { %p220_p11 = scmp.ne.s32.totalorder %s35_s27, %s219_s8  ;;  %p225_p13 = scmp.lt.s32.totalorder %s219_s8, %s219_s8 }
  0x1d   :  { %p226_p0 = por %p225_p13, %p224_p12 }
  0x1f   :  { %p227_p1 = pnand %p226_p0, %p220_p11 }
  0x21   :  { %230 = shalt.err (!%p227_p1)
}
  0x22   :  { %40 = dma.hbm_to_vmem [thread:$0]  %s327_s1, 512, %s35_s27, [#allocation6], %s260_s22, %s260_s22, %s261_s23  }
  0x23   :  { %253 = dma.done.wait [#allocation3], 512  }
  0x24   :  { %254 = vsyncadd [#allocation3], 4294966784 }
  0x25   :  { %255 = dma.done.wait [#allocation6], 512  }
  0x26   :  { %256 = vsyncadd [#allocation6], 4294966784  ;;  %v71_v0 = vld [vmem:[#allocation2] sm:$0xff]  ;;  %v72_v1 = vld [vmem:[#allocation2 + $0x8] sm:$0xff]  ;;  %v82_v56 = vlaneseq  ;;  %vm143_vm1 = vcmask 1040384   ;;  %vm69_vm2 = vcmask 0  }
  0x27   :  { %v73_v2 = vld [vmem:[#allocation2 + $0x10] sm:$0xff]  ;;  %v87_v3 = vadd.f32 %v72_v1, %v71_v0  ;;  %v74_v4 = vld [vmem:[#allocation2 + $0x18] sm:$0xff]  ;;  %v75_v33 = vld [vmem:[#allocation5] sm:$0xff] }
  0x28   :  { %v76_v35 = vld [vmem:[#allocation5 + $0x8] sm:$0xff]  ;;  %v77_v36 = vld [vmem:[#allocation5 + $0x10] sm:$0xff]  ;;  %v78_v37 = vld [vmem:[#allocation5 + $0x18] sm:$0xff]  ;;  %v83_v59 = vand.u32 127, %v82_v56 }
  0x29   :  { %v88_v5 = vadd.f32 %v87_v3, %v73_v2  ;;  %v79_v61 = vld [vmem:[%s328_s2] sm:$0x1]  ;;  %s264_s2 = smov [#allocation7]  }
  0x2a   :  { %vm86_vm0 = vcmp.lt.s32.totalorder %v83_v59, 32  ;;  %s164_s11 = sshll.u32 %s264_s2, 4  ;;  %s165_s11 = int_to_ptr.vmem [resolvable:$true] %s164_s11 }
  0x2b   :  { %v89_v6 = vadd.f32 %v88_v5, %v74_v4  ;;  %s231_s13 = scalar_lea.vmem %s165_s11, 16  ;;  %s235_s14 = scalar_lea.vmem %s165_s11, 32 }
  0x2c   :  { %p232_p2 = scmp.ne.s32.totalorder %s165_s11, %s231_s13  ;;  %p236_p3 = scmp.lt.s32.totalorder %s165_s11, %s165_s11 }
  0x2d   :  { %v90_v7 = vrot.slane %v89_v6, 4  ;;  %p237_p4 = scmp.lt.s32.totalorder %s235_s14, %s231_s13 }
  0x2f   :  { %v91_v8 = vadd.f32 %v90_v7, %v89_v6  ;;  %p238_p5 = por %p237_p4, %p236_p3 }
  0x31   :  { %v92_v9 = vrot.slane %v91_v8, 2  ;;  %p239_p6 = pnand %p238_p5, %p232_p2 }
  0x33   :  { %v93_v10 = vadd.f32 %v92_v9, %v91_v8 }
  0x35   :  { %v94_v11 = vrot.slane %v93_v10, 1 }
  0x37   :  { %v95_v12 = vadd.f32 %v94_v11, %v93_v10 }
  0x39   :  { %v97_v13 = vmul.f32 0.03125, %v95_v12 }
  0x3b   :  { %v98_v14 = vsub.f32 %v71_v0, %v97_v13  ;;  %v99_v15 = vsub.f32 %v72_v1, %v97_v13  ;;  %v100_v16 = vsub.f32 %v73_v2, %v97_v13  ;;  %v101_v17 = vsub.f32 %v74_v4, %v97_v13 }
  0x3c   :  { %v263_v2 = vmov 0.0  }
  0x3d   :  { %v102_v18 = vmul.f32 %v98_v14, %v98_v14  ;;  %v103_v19 = vmul.f32 %v99_v15, %v99_v15  ;;  %v104_v20 = vmul.f32 %v100_v16, %v100_v16  ;;  %v105_v21 = vmul.f32 %v101_v17, %v101_v17  ;;  %70 = vst.msk [vmem:[#allocation7] sm:$0x1] %vm69_vm2, %v263_v2 }
  0x3f   :  { %v106_v22 = vadd.f32 %v103_v19, %v102_v18 }
  0x41   :  { %v107_v23 = vadd.f32 %v106_v22, %v104_v20 }
  0x43   :  { %v108_v24 = vadd.f32 %v107_v23, %v105_v21 }
  0x44   :  { %v142_v10 = vld [vmem:[#allocation7] sm:$0x1] }
  0x45   :  { %v109_v25 = vrot.slane %v108_v24, 4 }
  0x47   :  { %v110_v26 = vadd.f32 %v109_v25, %v108_v24 }
  0x49   :  { %v111_v27 = vrot.slane %v110_v26, 2 }
  0x4b   :  { %v112_v28 = vadd.f32 %v111_v27, %v110_v26 }
  0x4d   :  { %v113_v29 = vrot.slane %v112_v28, 1 }
  0x4f   :  { %v114_v30 = vadd.f32 %v113_v29, %v112_v28 }
  0x51   :  { %v115_v31 = vmul.f32 0.032258064, %v114_v30 }
  0x53   :  { %v116_v32 = vadd.f32 1e-06, %v115_v31 }
  0x55   :  { %185 = vrsqrt.f32 %v116_v32 }
  0x5f   :  { %v186_v34 = vpop.eup %185 }
  0x60   :  { %v118_v38 = vmul.f32 %v186_v34, %v98_v14  ;;  %v119_v39 = vmul.f32 %v186_v34, %v99_v15  ;;  %v120_v40 = vmul.f32 %v186_v34, %v100_v16  ;;  %v121_v41 = vmul.f32 %v186_v34, %v101_v17 }
  0x62   :  { %v122_v42 = vsub.f32 %v75_v33, %v118_v38  ;;  %v123_v43 = vsub.f32 %v76_v35, %v119_v39  ;;  %v124_v44 = vsub.f32 %v77_v36, %v120_v40  ;;  %v125_v45 = vsub.f32 %v78_v37, %v121_v41 }
  0x64   :  { %v126_v46 = vmul.f32 %v122_v42, %v122_v42  ;;  %v127_v47 = vmul.f32 %v123_v43, %v123_v43  ;;  %v128_v48 = vmul.f32 %v124_v44, %v124_v44  ;;  %v129_v49 = vmul.f32 %v125_v45, %v125_v45 }
  0x66   :  { %v130_v50 = vadd.f32 %v127_v47, %v126_v46 }
  0x68   :  { %v131_v51 = vadd.f32 %v130_v50, %v128_v48 }
  0x6a   :  { %v132_v52 = vadd.f32 %v131_v51, %v129_v49 }
  0x6c   :  { %v133_v53 = vrot.slane %v132_v52, 4 }
  0x6e   :  { %v134_v54 = vadd.f32 %v133_v53, %v132_v52 }
  0x70   :  { %v135_v55 = vrot.slane %v134_v54, 2 }
  0x72   :  { %v136_v57 = vadd.f32 %v135_v55, %v134_v54 }
  0x74   :  { %v137_v58 = vrot.slane %v136_v57, 1 }
  0x76   :  { %v138_v60 = vadd.f32 %v137_v58, %v136_v57 }
  0x78   :  { %v139_v62 = vmul.f32 0.03125, %v138_v60 }
  0x7a   :  { %v140_v63 = vmul.f32 %v139_v62, %v79_v61 }
  0x7c   :  { %v141_v0 = vsel %vm86_vm0, %v140_v63, 0.0 }
  0x7d   :  { %v144_v1 = vsel %vm143_vm1, %v141_v0, 0.0 }
  0x7e   :  { %145 = vadd.xlane.f32.xlu0 %v144_v1 }
 0x10b   :  { %v146_v3 = vpop.xlane.xlu0 %145 }
 0x10c   :  { %v147_v4 = vrot.slane %v146_v3, 4 }
 0x10e   :  { %v148_v5 = vadd.f32 %v147_v4, %v146_v3 }
 0x110   :  { %v149_v6 = vrot.slane %v148_v5, 2 }
 0x112   :  { %v150_v7 = vadd.f32 %v149_v6, %v148_v5 }
 0x114   :  { %v151_v8 = vrot.slane %v150_v7, 1 }
 0x116   :  { %v152_v9 = vadd.f32 %v151_v8, %v150_v7 }
 0x118   :  { %177 = vpush %v152_v9 }
 0x149   :  { %s178_s12 = spop %177 }
 0x14a   :  { %v154_v11 = vstv %s178_s12 }
 0x14b   :  { %v155_v12 = vadd.f32 %v154_v11, %v142_v10 }
 0x14d   :  { %157 = vst.msk [vmem:[#allocation7] sm:$0x1] %vm69_vm2, %v155_v12 }
 0x14e   :  { %242 = shalt.err (!%p239_p6)
}
 0x14f   :  { %s243_s17 = scalar_lea.hbm %s329_s3, 16 }
 0x150   :  { %p244_p7 = scmp.ne.s32.totalorder %s329_s3, %s243_s17  ;;  %p247_p8 = scmp.lt.u32.totalorder %s243_s17, %s329_s3 }
 0x152   :  { %p249_p9 = pnand %p247_p8, %p244_p7 }
 0x154   :  { %252 = shalt.err (!%p249_p9)
}
 0x155   :  { %167 = dma.vmem_to_hbm [thread:$0]  %s165_s11, 16, %s329_s3, [#allocation4]  }
 0x156   :  { %257 = dma.done.wait [#allocation4], 16  }
 0x157   :  { %258 = vsyncadd [#allocation4], 4294967280 }
 0x158   :  { %171 = vsyncpa [#allocation3], 1 }
 0x159   :  { %172 = vsyncpa [#allocation6], 1 }
 0x15a   :  { %173 = vsyncpa [#allocation4], 1 }

</bundles_post_ra>
